<compile_context>
chip_gen: v6e
topology: v6e:2x2x1
jax: 0.10.0
libtpu: 0.0.40
codegen_flags: <defaults>
</compile_context>

<pallas_src>
import jax
import jax.numpy as jnp
from jax.experimental import pallas as pl
from jax.experimental.pallas import tpu as pltpu

_LANE = 128           # lane width: minor dims padded to a multiple of this
_BF16_SUBLANES = 16   # packed bf16 vreg tile is (16, 128) -> batch tile mult of 16
_MIB = 1024 * 1024

# Lazily-probed capability flag: single-buffered resident weights via
# pipeline_mode=pl.Buffered(1); falls back to default double-buffering.
_SINGLE_BUFFER_WEIGHTS = {"ok": True}


def _round_up(n, m):
    return ((n + m - 1) // m) * m


def _mlp_kernel(x_ref, w1_ref, b1_ref, w2_ref, b2_ref, out_ref):
    """Fused 2-layer MLP tile: sigmoid(sigmoid(x@W1+b1)@W2+b2)."""
    # fc1 on the MXU (bf16 inputs, f32 accumulate); bias+sigmoid epilogue in
    # f32 (EUP slot; safe on v5e which has no bf16 VPU/EUP path).
    h = jnp.dot(x_ref[...], w1_ref[...], preferred_element_type=jnp.float32)
    h = jax.nn.sigmoid(h + b1_ref[...])                   # (TB, Hp) + (1, Hp)

    # fc2: activation back to bf16 for the MXU, f32 accumulate.
    o = jnp.dot(h.astype(jnp.bfloat16), w2_ref[...],
                preferred_element_type=jnp.float32)
    o = jax.nn.sigmoid(o + b2_ref[...])                   # (TB, Cp) + (1, Cp)

    out_ref[...] = o.astype(out_ref.dtype)


def prepare_params(w1, b1, w2, b2):
    """One-time parameter prep (hoisted out of the per-call hot path).

    Pads every minor dim to a multiple of 128 (lane-dense loads, full MXU
    tiles) and casts weights to bf16.  Zero padding is exact: padded hidden
    units emit sigmoid(0)=0.5 but only ever multiply zero rows of W2, and
    padded output columns / batch rows are sliced off by the wrapper.

    w1: (In, H); b1: (H,)|(1,H); w2: (H, C); b2: (C,)|(1,C)
    (weights are (in, out), i.e. transposed vs PyTorch's (out, in)).
    """
    In, H = w1.shape
    H2, C = w2.shape
    assert H == H2, "w1/w2 hidden dims disagree"
    In_p, H_p, C_p = (_round_up(d, _LANE) for d in (In, H, C))

    w1f = jnp.asarray(w1, jnp.float32)
    w2f = jnp.asarray(w2, jnp.float32)
    b1f = jnp.reshape(jnp.asarray(b1, jnp.float32), (1, H))
    b2f = jnp.reshape(jnp.asarray(b2, jnp.float32), (1, C))

    w1p = jnp.zeros((In_p, H_p), jnp.bfloat16).at[:In, :H].set(w1f.astype(jnp.bfloat16))
    w2p = jnp.zeros((H_p, C_p), jnp.bfloat16).at[:H, :C].set(w2f.astype(jnp.bfloat16))
    b1p = jnp.zeros((1, H_p), jnp.float32).at[:, :H].set(b1f)
    b2p = jnp.zeros((1, C_p), jnp.float32).at[:, :C].set(b2f)

    return {
        "w1p": w1p, "b1p": b1p, "w2p": w2p, "b2p": b2p,   # padded kernel operands
        "w1": w1f, "b1": b1f, "w2": w2f, "b2": b2f,       # unpadded, tiny-shape bypass
        "In": In, "H": H, "C": C,
    }


def _pick_batch_tile(B, block_b):
    """Batch tile: multiple of 16 (bf16 (16,128) vreg pack), >=2 grid steps
    where possible (v7x megacore), minimal pad slack, capped at block_b."""
    B16 = _round_up(max(B, 1), _BF16_SUBLANES)
    n_tiles = max(2, pl.cdiv(B16, block_b))
    tb = min(block_b, _round_up(pl.cdiv(B16, n_tiles), _BF16_SUBLANES))
    return max(tb, _BF16_SUBLANES)


def _build_mlp_call(TB, In_p, H_p, C_p, B_p, out_dtype, single_buffer_weights):
    if single_buffer_weights:
        # Constant index_map -> operand is resident across the grid;
        # double-buffering buys nothing, so single-buffer to halve the
        # resident-weight VMEM footprint (matters most on v7x: 64 MiB).
        def resident(shape):
            return pl.BlockSpec(shape, lambda i: (0, 0),
                                pipeline_mode=pl.Buffered(1))
    else:
        def resident(shape):
            return pl.BlockSpec(shape, lambda i: (0, 0))

    out_bytes = jnp.dtype(out_dtype).itemsize
    # VMEM plan: x/out double-buffered, weights/biases single-buffered, plus
    # f32 intermediates; +50% headroom, clamped to [32 MiB, 64 MiB].
    footprint = (2 * TB * In_p * 2 + 2 * TB * C_p * out_bytes
                 + In_p * H_p * 2 + H_p * C_p * 2 + (H_p + C_p) * 4
                 + TB * (H_p + C_p) * 4)
    vmem_limit = int(min(max(1.5 * footprint, 32 * _MIB), 64 * _MIB))

    flops = 2 * B_p * (In_p * H_p + H_p * C_p)
    bytes_accessed = (B_p * In_p * 2 + In_p * H_p * 2 + H_p * C_p * 2
                      + (H_p + C_p) * 4 + B_p * C_p * out_bytes)

    return pl.pallas_call(
        _mlp_kernel,
        out_shape=jax.ShapeDtypeStruct((B_p, C_p), out_dtype),
        grid_spec=pltpu.PrefetchScalarGridSpec(
            num_scalar_prefetch=0,
            grid=(B_p // TB,),
            in_specs=[
                pl.BlockSpec((TB, In_p), lambda i: (i, 0)),   # x: blocked over batch
                resident((In_p, H_p)),                        # w1 (resident)
                resident((1, H_p)),                           # b1 (resident)
                resident((H_p, C_p)),                         # w2 (resident)
                resident((1, C_p)),                           # b2 (resident)
            ],
            out_specs=pl.BlockSpec((TB, C_p), lambda i: (i, 0)),
        ),
        compiler_params=pltpu.CompilerParams(
            # Batch tiles are independent -> megacore sharding on v7x,
            # harmless on single-TC v5e/v6e.
            dimension_semantics=("parallel",),
            vmem_limit_bytes=vmem_limit,
        ),
        cost_estimate=pl.CostEstimate(
            flops=flops,
            transcendentals=B_p * (H_p + C_p),
            bytes_accessed=bytes_accessed,
        ),
    )


def net_forward(x, params, *, block_b=256, out_dtype=jnp.float32,
                force_pallas=False, min_pallas_dim=64):
    """x: (B, In) -> sigmoid(sigmoid(x @ w1 + b1) @ w2 + b2), shape (B, C)."""
    B, In = x.shape
    assert In == params["In"], "input feature dim mismatch"
    C = params["C"]
    w1p, b1p, w2p, b2p = params["w1p"], params["b1p"], params["w2p"], params["b2p"]
    In_p, H_p = w1p.shape
    C_p = w2p.shape[1]

    # Tiny layers: 128-lane padding inflates MXU/HBM work 8-16x and the fixed
    # pallas_call overhead dominates -> plain XLA is faster.
    if not force_pallas and max(In, params["H"], C) < min_pallas_dim:
        h = jax.nn.sigmoid(x.astype(jnp.float32) @ params["w1"] + params["b1"])
        o = jax.nn.sigmoid(h @ params["w2"] + params["b2"])
        return o.astype(out_dtype)

    TB = _pick_batch_tile(B, block_b)
    B_p = _round_up(B, TB)

    # Pad x only on the axes that need it (single jnp.pad, no zeros+set
    # round-trip); a no-op when B and In are already aligned.
    xb = x.astype(jnp.bfloat16)
    pad_b, pad_in = B_p - B, In_p - In
    if pad_b or pad_in:
        xb = jnp.pad(xb, ((0, pad_b), (0, pad_in)))

    def run(single_buffer_weights):
        call = _build_mlp_call(TB, In_p, H_p, C_p, B_p, out_dtype,
                               single_buffer_weights)
        return call(xb, w1p, b1p, w2p, b2p)

    if _SINGLE_BUFFER_WEIGHTS["ok"]:
        try:
            out_p = run(True)
        except Exception:
            # pipeline_mode=pl.Buffered(1) unsupported on this jax/libtpu:
            # fall back to default double-buffered resident weights.
            _SINGLE_BUFFER_WEIGHTS["ok"] = False
            out_p = run(False)
    else:
        out_p = run(False)

    return out_p[:B, :C]


def init_params(key, input_size, hidden_size, num_classes):
    """Deterministic init mimicking nn.Linear default (uniform +/- 1/sqrt(fan_in)).
    Weights are stored as (in, out) = transpose of PyTorch's (out, in)."""
    k1, k2, k3, k4 = jax.random.split(key, 4)
    bound1 = 1.0 / jnp.sqrt(jnp.float32(input_size))
    bound2 = 1.0 / jnp.sqrt(jnp.float32(hidden_size))
    w1 = jax.random.uniform(k1, (input_size, hidden_size), jnp.float32, -bound1, bound1)
    b1 = jax.random.uniform(k2, (1, hidden_size), jnp.float32, -bound1, bound1)
    w2 = jax.random.uniform(k3, (hidden_size, num_classes), jnp.float32, -bound2, bound2)
    b2 = jax.random.uniform(k4, (1, num_classes), jnp.float32, -bound2, bound2)
    return w1, b1, w2, b2


if __name__ == "__main__":
    # Small shapes consistent with Net(input_size, hidden_size, num_classes).
    batch, input_size, hidden_size, num_classes = 8, 16, 32, 8

    key = jax.random.PRNGKey(0)
    kx, kp = jax.random.split(key)
    x = jax.random.normal(kx, (batch, input_size), jnp.float32)
    w1, b1, w2, b2 = init_params(kp, input_size, hidden_size, num_classes)
    params = prepare_params(w1, b1, w2, b2)   # one-time pad + bf16 cast (hoisted)

    # Force the Pallas path even at these tiny shapes so the kernel itself runs.
    out = net_forward(x, params, force_pallas=True)
    jax.block_until_ready(out)

    ref = jax.nn.sigmoid(jax.nn.sigmoid(x @ w1 + b1) @ w2 + b2)
    assert out.shape == (batch, num_classes)
    # bf16 MXU inputs -> loosened tolerance vs the f32 reference.
    assert jnp.allclose(out, ref, atol=2e-2), "mismatch vs reference (small shapes)"

    # Larger, lane-aligned shapes: exercises the multi-tile (>=2 grid steps,
    # megacore-parallel) path with no x padding needed.
    B2, IN2, H2, C2 = 192, 128, 256, 64
    kx2, kp2 = jax.random.split(jax.random.PRNGKey(1))
    xL = jax.random.normal(kx2, (B2, IN2), jnp.float32)
    w1L, b1L, w2L, b2L = init_params(kp2, IN2, H2, C2)
    paramsL = prepare_params(w1L, b1L, w2L, b2L)
    outL = net_forward(xL, paramsL, block_b=128)
    jax.block_until_ready(outL)
    refL = jax.nn.sigmoid(jax.nn.sigmoid(xL @ w1L + b1L) @ w2L + b2L)
    assert outL.shape == (B2, C2)
    assert jnp.allclose(outL, refL, atol=2e-2), "mismatch vs reference (large shapes)"

    print("KERNEL_OK")
</pallas_src>

<mosaic_0001>
module attributes {stable_mosaic.version = 11 : i64} {
  func.func @_mlp_kernel(%arg0: i32, %arg1: memref<16x128xbf16, #tpu.memory_space<vmem>>, %arg2: memref<128x128xbf16, #tpu.memory_space<vmem>>, %arg3: memref<1x128xf32, #tpu.memory_space<vmem>>, %arg4: memref<128x128xbf16, #tpu.memory_space<vmem>>, %arg5: memref<1x128xf32, #tpu.memory_space<vmem>>, %arg6: memref<16x128xf32, #tpu.memory_space<vmem>>) attributes {dimension_semantics = [#tpu.dimension_semantics<parallel>], iteration_bounds = array<i64: 1>, scalar_prefetch = 0 : i64, scratch_operands = 0 : i64, tpu.core_type = #tpu.core_type<tc>, window_params = [{transform_indices = @transform_0, window_bounds = array<i64: 16, 128>}, {pipeline_mode = #tpu.pipeline_mode<synchronous>, transform_indices = @transform_1, window_bounds = array<i64: 128, 128>}, {pipeline_mode = #tpu.pipeline_mode<synchronous>, transform_indices = @transform_2, window_bounds = array<i64: 1, 128>}, {pipeline_mode = #tpu.pipeline_mode<synchronous>, transform_indices = @transform_3, window_bounds = array<i64: 128, 128>}, {pipeline_mode = #tpu.pipeline_mode<synchronous>, transform_indices = @transform_4, window_bounds = array<i64: 1, 128>}, {transform_indices = @transform_5, window_bounds = array<i64: 16, 128>}]} {
    %c0 = arith.constant 0 : index
    %c0_0 = arith.constant 0 : index
    %0 = vector.load %arg1[%c0, %c0_0] : memref<16x128xbf16, #tpu.memory_space<vmem>>, vector<16x128xbf16>
    %c0_1 = arith.constant 0 : index
    %c0_2 = arith.constant 0 : index
    %1 = vector.load %arg2[%c0_1, %c0_2] : memref<128x128xbf16, #tpu.memory_space<vmem>>, vector<128x128xbf16>
    %cst = arith.constant dense<0.000000e+00> : vector<16x128xf32>
    %2 = tpu.matmul %0, %1, %cst {dimension_numbers = #tpu.dot_dimension_numbers<[1], [0], [0], [1], [0, 0, 1, 1], [], []>} : vector<16x128xbf16>, vector<128x128xbf16>, vector<16x128xf32> -> vector<16x128xf32>
    %c0_3 = arith.constant 0 : index
    %c0_4 = arith.constant 0 : index
    %3 = vector.load %arg3[%c0_3, %c0_4] : memref<1x128xf32, #tpu.memory_space<vmem>>, vector<1x128xf32>
    %4 = vector.broadcast %3 : vector<1x128xf32> to vector<16x128xf32>
    %5 = arith.addf %2, %4 : vector<16x128xf32>
    %6 = arith.negf %5 : vector<16x128xf32>
    %7 = math.exp %6 : vector<16x128xf32>
    %cst_5 = arith.constant 1.000000e+00 : f32
    %8 = vector.broadcast %cst_5 : f32 to vector<16x128xf32>
    %9 = arith.addf %8, %7 : vector<16x128xf32>
    %10 = arith.divf %8, %9 : vector<16x128xf32>
    %11 = arith.truncf %10 : vector<16x128xf32> to vector<16x128xbf16>
    %c0_6 = arith.constant 0 : index
    %c0_7 = arith.constant 0 : index
    %12 = vector.load %arg4[%c0_6, %c0_7] : memref<128x128xbf16, #tpu.memory_space<vmem>>, vector<128x128xbf16>
    %cst_8 = arith.constant dense<0.000000e+00> : vector<16x128xf32>
    %13 = tpu.matmul %11, %12, %cst_8 {dimension_numbers = #tpu.dot_dimension_numbers<[1], [0], [0], [1], [0, 0, 1, 1], [], []>} : vector<16x128xbf16>, vector<128x128xbf16>, vector<16x128xf32> -> vector<16x128xf32>
    %c0_9 = arith.constant 0 : index
    %c0_10 = arith.constant 0 : index
    %14 = vector.load %arg5[%c0_9, %c0_10] : memref<1x128xf32, #tpu.memory_space<vmem>>, vector<1x128xf32>
    %15 = vector.broadcast %14 : vector<1x128xf32> to vector<16x128xf32>
    %16 = arith.addf %13, %15 : vector<16x128xf32>
    %17 = arith.negf %16 : vector<16x128xf32>
    %18 = math.exp %17 : vector<16x128xf32>
    %cst_11 = arith.constant 1.000000e+00 : f32
    %19 = vector.broadcast %cst_11 : f32 to vector<16x128xf32>
    %20 = arith.addf %19, %18 : vector<16x128xf32>
    %21 = arith.divf %19, %20 : vector<16x128xf32>
    %c0_12 = arith.constant 0 : index
    %c0_13 = arith.constant 0 : index
    %22 = vector.load %arg6[%c0_12, %c0_13] : memref<16x128xf32, #tpu.memory_space<vmem>>, vector<16x128xf32>
    tpu.vector_store %arg6[%c0_12, %c0_13], %21 {strides = array<i32>} : memref<16x128xf32, #tpu.memory_space<vmem>>, vector<16x128xf32>,
    return
  }
  func.func @transform_0(%arg0: i32) -> (i32, i32) {
    %c0_i32 = arith.constant 0 : i32
    %c0_i32_0 = arith.constant 0 : i32
    return %arg0, %c0_i32 : i32, i32
  }
  func.func @transform_1(%arg0: i32) -> (i32, i32) {
    %c0_i32 = arith.constant 0 : i32
    %c0_i32_0 = arith.constant 0 : i32
    %c0_i32_1 = arith.constant 0 : i32
    return %c0_i32, %c0_i32_0 : i32, i32
  }
  func.func @transform_2(%arg0: i32) -> (i32, i32) {
    %c0_i32 = arith.constant 0 : i32
    %c0_i32_0 = arith.constant 0 : i32
    %c0_i32_1 = arith.constant 0 : i32
    return %c0_i32, %c0_i32_0 : i32, i32
  }
  func.func @transform_3(%arg0: i32) -> (i32, i32) {
    %c0_i32 = arith.constant 0 : i32
    %c0_i32_0 = arith.constant 0 : i32
    %c0_i32_1 = arith.constant 0 : i32
    return %c0_i32, %c0_i32_0 : i32, i32
  }
  func.func @transform_4(%arg0: i32) -> (i32, i32) {
    %c0_i32 = arith.constant 0 : i32
    %c0_i32_0 = arith.constant 0 : i32
    %c0_i32_1 = arith.constant 0 : i32
    return %c0_i32, %c0_i32_0 : i32, i32
  }
  func.func @transform_5(%arg0: i32) -> (i32, i32) {
    %c0_i32 = arith.constant 0 : i32
    %c0_i32_0 = arith.constant 0 : i32
    return %arg0, %c0_i32 : i32, i32
  }
}

module attributes {stable_mosaic.version = 11 : i64} {
  func.func @_mlp_kernel(%arg0: i32, %arg1: memref<16x128xbf16, #tpu.memory_space<vmem>>, %arg2: memref<128x128xbf16, #tpu.memory_space<vmem>>, %arg3: memref<1x128xf32, #tpu.memory_space<vmem>>, %arg4: memref<128x128xbf16, #tpu.memory_space<vmem>>, %arg5: memref<1x128xf32, #tpu.memory_space<vmem>>, %arg6: memref<16x128xf32, #tpu.memory_space<vmem>>) attributes {dimension_semantics = [#tpu.dimension_semantics<parallel>], iteration_bounds = array<i64: 1>, scalar_prefetch = 0 : i64, scratch_operands = 0 : i64, tpu.core_type = #tpu.core_type<tc>, window_params = [{transform_indices = @transform_0, window_bounds = array<i64: 16, 128>}, {pipeline_mode = #tpu.pipeline_mode<synchronous>, transform_indices = @transform_1, window_bounds = array<i64: 128, 128>}, {pipeline_mode = #tpu.pipeline_mode<synchronous>, transform_indices = @transform_2, window_bounds = array<i64: 1, 128>}, {pipeline_mode = #tpu.pipeline_mode<synchronous>, transform_indices = @transform_3, window_bounds = array<i64: 128, 128>}, {pipeline_mode = #tpu.pipeline_mode<synchronous>, transform_indices = @transform_4, window_bounds = array<i64: 1, 128>}, {transform_indices = @transform_5, window_bounds = array<i64: 16, 128>}]} {
    %c0 = arith.constant 0 : index
    %c0_0 = arith.constant 0 : index
    %0 = vector.load %arg1[%c0, %c0_0] : memref<16x128xbf16, #tpu.memory_space<vmem>>, vector<16x128xbf16>
    %c0_1 = arith.constant 0 : index
    %c0_2 = arith.constant 0 : index
    %1 = vector.load %arg2[%c0_1, %c0_2] : memref<128x128xbf16, #tpu.memory_space<vmem>>, vector<128x128xbf16>
    %cst = arith.constant dense<0.000000e+00> : vector<16x128xf32>
    %2 = tpu.matmul %0, %1, %cst {dimension_numbers = #tpu.dot_dimension_numbers<[1], [0], [0], [1], [0, 0, 1, 1], [], []>} : vector<16x128xbf16>, vector<128x128xbf16>, vector<16x128xf32> -> vector<16x128xf32>
    %c0_3 = arith.constant 0 : index
    %c0_4 = arith.constant 0 : index
    %3 = vector.load %arg3[%c0_3, %c0_4] : memref<1x128xf32, #tpu.memory_space<vmem>>, vector<1x128xf32>
    %4 = vector.broadcast %3 : vector<1x128xf32> to vector<16x128xf32>
    %5 = arith.addf %2, %4 : vector<16x128xf32>
    %6 = arith.negf %5 : vector<16x128xf32>
    %7 = math.exp %6 : vector<16x128xf32>
    %cst_5 = arith.constant 1.000000e+00 : f32
    %8 = vector.broadcast %cst_5 : f32 to vector<16x128xf32>
    %9 = arith.addf %8, %7 : vector<16x128xf32>
    %10 = arith.divf %8, %9 : vector<16x128xf32>
    %11 = arith.truncf %10 : vector<16x128xf32> to vector<16x128xbf16>
    %c0_6 = arith.constant 0 : index
    %c0_7 = arith.constant 0 : index
    %12 = vector.load %arg4[%c0_6, %c0_7] : memref<128x128xbf16, #tpu.memory_space<vmem>>, vector<128x128xbf16>
    %cst_8 = arith.constant dense<0.000000e+00> : vector<16x128xf32>
    %13 = tpu.matmul %11, %12, %cst_8 {dimension_numbers = #tpu.dot_dimension_numbers<[1], [0], [0], [1], [0, 0, 1, 1], [], []>} : vector<16x128xbf16>, vector<128x128xbf16>, vector<16x128xf32> -> vector<16x128xf32>
    %c0_9 = arith.constant 0 : index
    %c0_10 = arith.constant 0 : index
    %14 = vector.load %arg5[%c0_9, %c0_10] : memref<1x128xf32, #tpu.memory_space<vmem>>, vector<1x128xf32>
    %15 = vector.broadcast %14 : vector<1x128xf32> to vector<16x128xf32>
    %16 = arith.addf %13, %15 : vector<16x128xf32>
    %17 = arith.negf %16 : vector<16x128xf32>
    %18 = math.exp %17 : vector<16x128xf32>
    %cst_11 = arith.constant 1.000000e+00 : f32
    %19 = vector.broadcast %cst_11 : f32 to vector<16x128xf32>
    %20 = arith.addf %19, %18 : vector<16x128xf32>
    %21 = arith.divf %19, %20 : vector<16x128xf32>
    %c0_12 = arith.constant 0 : index
    %c0_13 = arith.constant 0 : index
    %22 = vector.load %arg6[%c0_12, %c0_13] : memref<16x128xf32, #tpu.memory_space<vmem>>, vector<16x128xf32>
    tpu.vector_store %arg6[%c0_12, %c0_13], %21 {strides = array<i32>} : memref<16x128xf32, #tpu.memory_space<vmem>>, vector<16x128xf32>,
    return
  }
  func.func @transform_0(%arg0: i32) -> (i32, i32) {
    %c0_i32 = arith.constant 0 : i32
    %c0_i32_0 = arith.constant 0 : i32
    return %arg0, %c0_i32 : i32, i32
  }
  func.func @transform_1(%arg0: i32) -> (i32, i32) {
    %c0_i32 = arith.constant 0 : i32
    %c0_i32_0 = arith.constant 0 : i32
    %c0_i32_1 = arith.constant 0 : i32
    return %c0_i32, %c0_i32_0 : i32, i32
  }
  func.func @transform_2(%arg0: i32) -> (i32, i32) {
    %c0_i32 = arith.constant 0 : i32
    %c0_i32_0 = arith.constant 0 : i32
    %c0_i32_1 = arith.constant 0 : i32
    return %c0_i32, %c0_i32_0 : i32, i32
  }
  func.func @transform_3(%arg0: i32) -> (i32, i32) {
    %c0_i32 = arith.constant 0 : i32
    %c0_i32_0 = arith.constant 0 : i32
    %c0_i32_1 = arith.constant 0 : i32
    return %c0_i32, %c0_i32_0 : i32, i32
  }
  func.func @transform_4(%arg0: i32) -> (i32, i32) {
    %c0_i32 = arith.constant 0 : i32
    %c0_i32_0 = arith.constant 0 : i32
    %c0_i32_1 = arith.constant 0 : i32
    return %c0_i32, %c0_i32_0 : i32, i32
  }
  func.func @transform_5(%arg0: i32) -> (i32, i32) {
    %c0_i32 = arith.constant 0 : i32
    %c0_i32_0 = arith.constant 0 : i32
    return %arg0, %c0_i32 : i32, i32
  }
}

</mosaic_0001>

<bundles_post_ra>
// kernel: tpu_custom_call.1
= control target key start
LH: loop header
LB: loop body
LE: loop exit
PB: predicated region body
PF: predicated region fallthrough
CT: control target
= control target key end

     0   :  { %10 = vsyncpa [#allocation3], 0  ;;  %s608_s0 = inlined_call_operand.hbm [shape: bf16[16,128], index: 0, kind: input, shape index: {}]   ;;  %s609_s1 = inlined_call_operand.hbm [shape: bf16[128,128], index: 1, kind: input, shape index: {}]   ;;  %s610_s2 = inlined_call_operand.vmem [shape: f32[1,128], index: 2, kind: input, shape index: {}]   ;;  %s611_s3 = inlined_call_operand.hbm [shape: bf16[128,128], index: 3, kind: input, shape index: {}]   ;;  %s612_s4 = inlined_call_operand.vmem [shape: f32[1,128], index: 4, kind: input, shape index: {}]   ;;  %s613_s5 = inlined_call_operand.hbm [shape: f32[16,128], index: 5, kind: output, shape index: {}]  }
   0x1   :  { %11 = vsyncpa [#allocation6], 0 }
   0x2   :  { %12 = vsyncpa [#allocation4], 0  ;;  %s550_s18 = smov [#allocation5]   ;;  %s551_s20 = smov [#allocation2]  }
   0x3   :  { %s30_s19 = sshll.u32 %s550_s18, 4  ;;  %s18_s21 = sshll.u32 %s551_s20, 4  ;;  %s31_s19 = int_to_ptr.vmem [resolvable:$true] %s30_s19  ;;  %s19_s21 = int_to_ptr.vmem [resolvable:$true] %s18_s21 }
   0x4   :  { %s472_s22 = scalar_lea.vmem %s31_s19, 1024  ;;  %p477_p1 = scmp.lt.s32.totalorder %s31_s19, %s31_s19 }
   0x5   :  { %p473_p0 = scmp.ne.s32.totalorder %s31_s19, %s472_s22  ;;  %p478_p2 = scmp.lt.s32.totalorder %s472_s22, %s472_s22 }
   0x7   :  { %p479_p3 = por %p478_p2, %p477_p1 }
   0x9   :  { %p480_p4 = pnand %p479_p3, %p473_p0 }
   0xb   :  { %483 = shalt.err (!%p480_p4)
}
   0xc   :  { %s552_s23 = smov 64   ;;  %s553_s24 = smov 4  }
   0xd   :  { %36 = dma.hbm_to_vmem [thread:$0]  %s609_s1, 1024, %s31_s19, [#allocation6], %s552_s23, %s552_s23, %s553_s24  }
   0xe   :  { %s492_s27 = scalar_lea.vmem %s19_s21, 128  ;;  %p497_p6 = scmp.lt.s32.totalorder %s19_s21, %s19_s21 }
   0xf   :  { %p493_p5 = scmp.ne.s32.totalorder %s19_s21, %s492_s27  ;;  %p498_p7 = scmp.lt.s32.totalorder %s492_s27, %s492_s27 }
  0x11   :  { %p499_p8 = por %p498_p7, %p497_p6 }
  0x13   :  { %p500_p9 = pnand %p499_p8, %p493_p5 }
  0x15   :  { %503 = shalt.err (!%p500_p9)
}
  0x16   :  { %24 = dma.hbm_to_vmem [thread:$0]  %s608_s0, 128, %s19_s21, [#allocation3], %s552_s23, %s552_s23, %s553_s24  }
  0x17   :  { %s554_s30 = smov [#allocation7]  }
  0x18   :  { %s44_s6 = sshll.u32 %s554_s30, 4  ;;  %s45_s6 = int_to_ptr.vmem [resolvable:$true] %s44_s6 }
  0x19   :  { %s512_s7 = scalar_lea.vmem %s45_s6, 1024  ;;  %p517_p11 = scmp.lt.s32.totalorder %s45_s6, %s45_s6 }
  0x1a   :  { %p513_p10 = scmp.ne.s32.totalorder %s45_s6, %s512_s7  ;;  %p518_p12 = scmp.lt.s32.totalorder %s512_s7, %s512_s7 }
  0x1c   :  { %p519_p13 = por %p518_p12, %p517_p11 }
  0x1e   :  { %p520_p0 = pnand %p519_p13, %p513_p10 }
  0x20   :  { %523 = shalt.err (!%p520_p0)
}
  0x21   :  { %50 = dma.hbm_to_vmem [thread:$0]  %s611_s3, 1024, %s45_s6, [#allocation6], %s552_s23, %s552_s23, %s553_s24  }
  0x22   :  { %544 = dma.done.wait [#allocation3], 128  }
  0x23   :  { %545 = vsyncadd [#allocation3], 4294967168 }
  0x24   :  { %546 = dma.done.wait [#allocation6], 2048  }
  0x25   :  { %547 = vsyncadd [#allocation6], 4294965248  ;;  %v555_v0 = vmov 0.0   ;;  %vm556_vm0 = vmmov 0   ;;  %v431_v1 = vld [vmem:[#allocation5 + $0x38] sm:$0xff]   ;;  %v432_v2 = vld [vmem:[#allocation5 + $0x30] sm:$0xff]  }
  0x26   :  { %381 = vmatprep.subr.bf16.mxu0 %v555_v0  ;;  %397 = vmatprep.mubr.msk.bf16.mxu0 %vm556_vm0, %v555_v0  ;;  %v433_v3 = vld [vmem:[#allocation5 + $0x28] sm:$0xff]   ;;  %v434_v4 = vld [vmem:[#allocation5 + $0x20] sm:$0xff]   ;;  %v435_v5 = vld [vmem:[#allocation5 + $0x18] sm:$0xff]   ;;  %s557_s10 = smov [#allocation8]  }
  0x27   :  { %401 = vmatprep.subr.bf16.mxu1 %v555_v0  ;;  %417 = vmatprep.mubr.msk.bf16.mxu1 %vm556_vm0, %v555_v0  ;;  %v436_v6 = vld [vmem:[#allocation5 + $0x10] sm:$0xff]   ;;  %v437_v7 = vld [vmem:[#allocation5 + $0x8] sm:$0xff]   ;;  %v438_v8 = vld [vmem:[#allocation5] sm:$0xff]   ;;  %s327_s11 = sshll.u32 %s557_s10, 4  ;;  %s328_s11 = int_to_ptr.vmem [resolvable:$true] %s327_s11 }
  0x28   :  { %382 = vmatpush3.bf16.msra.mxu0 %v431_v1  ;;  %v439_v9 = vld [vmem:[#allocation2] sm:$0xff]   ;;  %v441_v11 = vld [vmem:[#allocation7 + $0x30] sm:$0xff]   ;;  %v442_v12 = vld [vmem:[#allocation7 + $0x28] sm:$0xff]   ;;  %p529_p2 = scmp.lt.s32.totalorder %s328_s11, %s328_s11 }
  0x29   :  { %383 = vmatprep.subr.bf16.mxu0 %v555_v0  ;;  %v440_v10 = vld [vmem:[#allocation7 + $0x38] sm:$0xff]   ;;  %v443_v13 = vld [vmem:[#allocation7 + $0x20] sm:$0xff]   ;;  %v445_v15 = vld [vmem:[#allocation7 + $0x10] sm:$0xff]  }
  0x2a   :  { %402 = vmatpush3.bf16.msra.mxu1 %v440_v10  ;;  %v444_v14 = vld [vmem:[#allocation7 + $0x18] sm:$0xff]   ;;  %v446_v16 = vld [vmem:[#allocation7 + $0x8] sm:$0xff]   ;;  %v447_v17 = vld [vmem:[#allocation7] sm:$0xff]  }
  0x2b   :  { %403 = vmatprep.subr.bf16.mxu1 %v555_v0  ;;  %v340_v18 = vld [vmem:[%s610_s2] ss:$0 sm:$0xff] }
  0x2c   :  { %384 = vmatpush3.bf16.msra.mxu0 %v432_v2  ;;  %v352_v34 = vld [vmem:[%s612_s4] ss:$0 sm:$0xff]  ;;  %s524_s4 = scalar_lea.vmem %s328_s11, 256 }
  0x2d   :  { %385 = vmatprep.subr.bf16.mxu0 %v555_v0  ;;  %p525_p1 = scmp.ne.s32.totalorder %s328_s11, %s524_s4  ;;  %p530_p3 = scmp.lt.s32.totalorder %s524_s4, %s524_s4 }
  0x2e   :  { %404 = vmatpush3.bf16.msra.mxu1 %v441_v11 }
  0x2f   :  { %405 = vmatprep.subr.bf16.mxu1 %v555_v0  ;;  %p531_p4 = por %p530_p3, %p529_p2 }
  0x30   :  { %386 = vmatpush3.bf16.msra.mxu0 %v433_v3 }
  0x31   :  { %387 = vmatprep.subr.bf16.mxu0 %v555_v0  ;;  %p532_p5 = pnand %p531_p4, %p525_p1 }
  0x32   :  { %406 = vmatpush3.bf16.msra.mxu1 %v442_v12 }
  0x33   :  { %407 = vmatprep.subr.bf16.mxu1 %v555_v0 }
  0x34   :  { %388 = vmatpush3.bf16.msra.mxu0 %v434_v4 }
  0x35   :  { %389 = vmatprep.subr.bf16.mxu0 %v555_v0 }
  0x36   :  { %408 = vmatpush3.bf16.msra.mxu1 %v443_v13 }
  0x37   :  { %409 = vmatprep.subr.bf16.mxu1 %v555_v0 }
  0x38   :  { %390 = vmatpush3.bf16.msra.mxu0 %v435_v5 }
  0x39   :  { %391 = vmatprep.subr.bf16.mxu0 %v555_v0 }
  0x3a   :  { %410 = vmatpush3.bf16.msra.mxu1 %v444_v14 }
  0x3b   :  { %411 = vmatprep.subr.bf16.mxu1 %v555_v0 }
  0x3c   :  { %392 = vmatpush3.bf16.msra.mxu0 %v436_v6 }
  0x3d   :  { %393 = vmatprep.subr.bf16.mxu0 %v555_v0 }
  0x3e   :  { %412 = vmatpush3.bf16.msra.mxu1 %v445_v15 }
  0x3f   :  { %413 = vmatprep.subr.bf16.mxu1 %v555_v0 }
  0x40   :  { %394 = vmatpush3.bf16.msra.mxu0 %v437_v7 }
  0x41   :  { %395 = vmatprep.subr.bf16.mxu0 %v555_v0 }
  0x42   :  { %414 = vmatpush3.bf16.msra.mxu1 %v446_v16 }
  0x43   :  { %415 = vmatprep.subr.bf16.mxu1 %v555_v0 }
  0x44   :  { %396 = vmatpush3.bf16.msra.mxu0 %v438_v8 }
  0x46   :  { %416 = vmatpush3.bf16.msra.mxu1 %v447_v17 }
  0x47   :  { %398 = vmatmul.mubr.bf16.vlgmr.msra.gmra.mxu0 %v439_v9 }
 0x107   :  { %v176_v19 = vpop.f32.mrf.mxu0 }
 0x108   :  { %v177_v20 = vadd.f32 %v340_v18, %v176_v19 }
 0x109   :  { %v399_v21 = vpop.f32.mrf.mxu0 }
 0x10a   :  { %v350_v22 = vmul.f32 -1.442695, %v177_v20 }
 0x10b   :  { %v179_v23 = vpop.f32.mrf.mxu0 }
 0x10c   :  { %448 = vpow2.f32 %v350_v22  ;;  %v180_v24 = vadd.f32 %v340_v18, %v179_v23 }
 0x10d   :  { %v400_v25 = vpop.f32.mrf.mxu0 }
 0x10e   :  { %v351_v26 = vmul.f32 -1.442695, %v180_v24 }
 0x110   :  { %450 = vpow2.f32 %v351_v26 }
 0x119   :  { %v449_v27 = vpop.eup %448 }
 0x11a   :  { %v189_v28 = vadd.f32 1.0, %v449_v27 }
 0x11c   :  { %452 = vrcp.f32 %v189_v28 }
 0x11d   :  { %v451_v29 = vpop.eup %450 }
 0x11e   :  { %v190_v30 = vadd.f32 1.0, %v451_v29 }
 0x120   :  { %454 = vrcp.f32 %v190_v30 }
 0x129   :  { %v453_v31 = vpop.eup %452 }
 0x12d   :  { %v455_v32 = vpop.eup %454 }
 0x12e   :  { %v195_v33 = vpack.c.bf16 %v455_v32, %v453_v31 }
 0x130   :  { %418 = vmatmul.mubr.bf16.vlgmr.msra.gmra.mxu1 %v195_v33 }
 0x1f0   :  { %v301_v35 = vpop.f32.mrf.mxu1 }
 0x1f1   :  { %v302_v36 = vadd.f32 %v352_v34, %v301_v35 }
 0x1f2   :  { %v419_v37 = vpop.f32.mrf.mxu1 }
 0x1f3   :  { %v361_v38 = vmul.f32 -1.442695, %v302_v36 }
 0x1f4   :  { %v304_v39 = vpop.f32.mrf.mxu1 }
 0x1f5   :  { %456 = vpow2.f32 %v361_v38  ;;  %v305_v40 = vadd.f32 %v352_v34, %v304_v39 }
 0x1f6   :  { %v420_v41 = vpop.f32.mrf.mxu1 }
 0x1f7   :  { %v362_v42 = vmul.f32 -1.442695, %v305_v40 }
 0x1f9   :  { %458 = vpow2.f32 %v362_v42 }
 0x202   :  { %v457_v43 = vpop.eup %456 }
 0x203   :  { %v314_v44 = vadd.f32 1.0, %v457_v43 }
 0x205   :  { %460 = vrcp.f32 %v314_v44 }
 0x206   :  { %v459_v45 = vpop.eup %458 }
 0x207   :  { %v315_v46 = vadd.f32 1.0, %v459_v45 }
 0x209   :  { %462 = vrcp.f32 %v315_v46 }
 0x212   :  { %v461_v47 = vpop.eup %460 }
 0x213   :  { %320 = vst [vmem:[#allocation8] sm:$0xff] %v461_v47 }
 0x216   :  { %v463_v48 = vpop.eup %462 }
 0x217   :  { %321 = vst [vmem:[#allocation8 + $0x8] sm:$0xff] %v463_v48 }
 0x218   :  { %535 = shalt.err (!%p532_p5)
}
 0x219   :  { %s558_s12 = smov 128   ;;  %s559_s13 = smov 8  }
 0x21a   :  { %333 = dma.vmem_to_hbm [thread:$0]  %s328_s11, 256, %s613_s5, [#allocation4], %s558_s12, %s558_s12, %s559_s13  }
 0x21b   :  { %548 = dma.done.wait [#allocation4], 256  }
 0x21c   :  { %549 = vsyncadd [#allocation4], 4294967040 }
 0x21d   :  { %337 = vsyncpa [#allocation3], 1 }
 0x21e   :  { %338 = vsyncpa [#allocation6], 1 }
 0x21f   :  { %339 = vsyncpa [#allocation4], 1 }

// kernel: tpu_custom_call.1
= control target key start
LH: loop header
LB: loop body
LE: loop exit
PB: predicated region body
PF: predicated region fallthrough
CT: control target
= control target key end

     0   :  { %10 = vsyncpa [#allocation3], 0  ;;  %s608_s0 = inlined_call_operand.hbm [shape: bf16[16,128], index: 0, kind: input, shape index: {}]   ;;  %s609_s1 = inlined_call_operand.hbm [shape: bf16[128,128], index: 1, kind: input, shape index: {}]   ;;  %s610_s2 = inlined_call_operand.vmem [shape: f32[1,128], index: 2, kind: input, shape index: {}]   ;;  %s611_s3 = inlined_call_operand.hbm [shape: bf16[128,128], index: 3, kind: input, shape index: {}]   ;;  %s612_s4 = inlined_call_operand.vmem [shape: f32[1,128], index: 4, kind: input, shape index: {}]   ;;  %s613_s5 = inlined_call_operand.hbm [shape: f32[16,128], index: 5, kind: output, shape index: {}]  }
   0x1   :  { %11 = vsyncpa [#allocation6], 0 }
   0x2   :  { %12 = vsyncpa [#allocation4], 0  ;;  %s550_s18 = smov [#allocation5]   ;;  %s551_s20 = smov [#allocation2]  }
   0x3   :  { %s30_s19 = sshll.u32 %s550_s18, 4  ;;  %s18_s21 = sshll.u32 %s551_s20, 4  ;;  %s31_s19 = int_to_ptr.vmem [resolvable:$true] %s30_s19  ;;  %s19_s21 = int_to_ptr.vmem [resolvable:$true] %s18_s21 }
   0x4   :  { %s472_s22 = scalar_lea.vmem %s31_s19, 1024  ;;  %p477_p1 = scmp.lt.s32.totalorder %s31_s19, %s31_s19 }
   0x5   :  { %p473_p0 = scmp.ne.s32.totalorder %s31_s19, %s472_s22  ;;  %p478_p2 = scmp.lt.s32.totalorder %s472_s22, %s472_s22 }
   0x7   :  { %p479_p3 = por %p478_p2, %p477_p1 }
   0x9   :  { %p480_p4 = pnand %p479_p3, %p473_p0 }
   0xb   :  { %483 = shalt.err (!%p480_p4)
}
   0xc   :  { %s552_s23 = smov 64   ;;  %s553_s24 = smov 4  }
   0xd   :  { %36 = dma.hbm_to_vmem [thread:$0]  %s609_s1, 1024, %s31_s19, [#allocation6], %s552_s23, %s552_s23, %s553_s24  }
   0xe   :  { %s492_s27 = scalar_lea.vmem %s19_s21, 128  ;;  %p497_p6 = scmp.lt.s32.totalorder %s19_s21, %s19_s21 }
   0xf   :  { %p493_p5 = scmp.ne.s32.totalorder %s19_s21, %s492_s27  ;;  %p498_p7 = scmp.lt.s32.totalorder %s492_s27, %s492_s27 }
  0x11   :  { %p499_p8 = por %p498_p7, %p497_p6 }
  0x13   :  { %p500_p9 = pnand %p499_p8, %p493_p5 }
  0x15   :  { %503 = shalt.err (!%p500_p9)
}
  0x16   :  { %24 = dma.hbm_to_vmem [thread:$0]  %s608_s0, 128, %s19_s21, [#allocation3], %s552_s23, %s552_s23, %s553_s24  }
  0x17   :  { %s554_s30 = smov [#allocation7]  }
  0x18   :  { %s44_s6 = sshll.u32 %s554_s30, 4  ;;  %s45_s6 = int_to_ptr.vmem [resolvable:$true] %s44_s6 }
  0x19   :  { %s512_s7 = scalar_lea.vmem %s45_s6, 1024  ;;  %p517_p11 = scmp.lt.s32.totalorder %s45_s6, %s45_s6 }
  0x1a   :  { %p513_p10 = scmp.ne.s32.totalorder %s45_s6, %s512_s7  ;;  %p518_p12 = scmp.lt.s32.totalorder %s512_s7, %s512_s7 }
  0x1c   :  { %p519_p13 = por %p518_p12, %p517_p11 }
  0x1e   :  { %p520_p0 = pnand %p519_p13, %p513_p10 }
  0x20   :  { %523 = shalt.err (!%p520_p0)
}
  0x21   :  { %50 = dma.hbm_to_vmem [thread:$0]  %s611_s3, 1024, %s45_s6, [#allocation6], %s552_s23, %s552_s23, %s553_s24  }
  0x22   :  { %544 = dma.done.wait [#allocation3], 128  }
  0x23   :  { %545 = vsyncadd [#allocation3], 4294967168 }
  0x24   :  { %546 = dma.done.wait [#allocation6], 2048  }
  0x25   :  { %547 = vsyncadd [#allocation6], 4294965248  ;;  %v555_v0 = vmov 0.0   ;;  %vm556_vm0 = vmmov 0   ;;  %v431_v1 = vld [vmem:[#allocation5 + $0x38] sm:$0xff]   ;;  %v432_v2 = vld [vmem:[#allocation5 + $0x30] sm:$0xff]  }
  0x26   :  { %381 = vmatprep.subr.bf16.mxu0 %v555_v0  ;;  %397 = vmatprep.mubr.msk.bf16.mxu0 %vm556_vm0, %v555_v0  ;;  %v433_v3 = vld [vmem:[#allocation5 + $0x28] sm:$0xff]   ;;  %v434_v4 = vld [vmem:[#allocation5 + $0x20] sm:$0xff]   ;;  %v435_v5 = vld [vmem:[#allocation5 + $0x18] sm:$0xff]   ;;  %s557_s10 = smov [#allocation8]  }
  0x27   :  { %401 = vmatprep.subr.bf16.mxu1 %v555_v0  ;;  %417 = vmatprep.mubr.msk.bf16.mxu1 %vm556_vm0, %v555_v0  ;;  %v436_v6 = vld [vmem:[#allocation5 + $0x10] sm:$0xff]   ;;  %v437_v7 = vld [vmem:[#allocation5 + $0x8] sm:$0xff]   ;;  %v438_v8 = vld [vmem:[#allocation5] sm:$0xff]   ;;  %s327_s11 = sshll.u32 %s557_s10, 4  ;;  %s328_s11 = int_to_ptr.vmem [resolvable:$true] %s327_s11 }
  0x28   :  { %382 = vmatpush3.bf16.msra.mxu0 %v431_v1  ;;  %v439_v9 = vld [vmem:[#allocation2] sm:$0xff]   ;;  %v441_v11 = vld [vmem:[#allocation7 + $0x30] sm:$0xff]   ;;  %v442_v12 = vld [vmem:[#allocation7 + $0x28] sm:$0xff]   ;;  %p529_p2 = scmp.lt.s32.totalorder %s328_s11, %s328_s11 }
  0x29   :  { %383 = vmatprep.subr.bf16.mxu0 %v555_v0  ;;  %v440_v10 = vld [vmem:[#allocation7 + $0x38] sm:$0xff]   ;;  %v443_v13 = vld [vmem:[#allocation7 + $0x20] sm:$0xff]   ;;  %v445_v15 = vld [vmem:[#allocation7 + $0x10] sm:$0xff]  }
  0x2a   :  { %402 = vmatpush3.bf16.msra.mxu1 %v440_v10  ;;  %v444_v14 = vld [vmem:[#allocation7 + $0x18] sm:$0xff]   ;;  %v446_v16 = vld [vmem:[#allocation7 + $0x8] sm:$0xff]   ;;  %v447_v17 = vld [vmem:[#allocation7] sm:$0xff]  }
  0x2b   :  { %403 = vmatprep.subr.bf16.mxu1 %v555_v0  ;;  %v340_v18 = vld [vmem:[%s610_s2] ss:$0 sm:$0xff] }
  0x2c   :  { %384 = vmatpush3.bf16.msra.mxu0 %v432_v2  ;;  %v352_v34 = vld [vmem:[%s612_s4] ss:$0 sm:$0xff]  ;;  %s524_s4 = scalar_lea.vmem %s328_s11, 256 }
  0x2d   :  { %385 = vmatprep.subr.bf16.mxu0 %v555_v0  ;;  %p525_p1 = scmp.ne.s32.totalorder %s328_s11, %s524_s4  ;;  %p530_p3 = scmp.lt.s32.totalorder %s524_s4, %s524_s4 }
  0x2e   :  { %404 = vmatpush3.bf16.msra.mxu1 %v441_v11 }
  0x2f   :  { %405 = vmatprep.subr.bf16.mxu1 %v555_v0  ;;  %p531_p4 = por %p530_p3, %p529_p2 }
  0x30   :  { %386 = vmatpush3.bf16.msra.mxu0 %v433_v3 }
  0x31   :  { %387 = vmatprep.subr.bf16.mxu0 %v555_v0  ;;  %p532_p5 = pnand %p531_p4, %p525_p1 }
  0x32   :  { %406 = vmatpush3.bf16.msra.mxu1 %v442_v12 }
  0x33   :  { %407 = vmatprep.subr.bf16.mxu1 %v555_v0 }
  0x34   :  { %388 = vmatpush3.bf16.msra.mxu0 %v434_v4 }
  0x35   :  { %389 = vmatprep.subr.bf16.mxu0 %v555_v0 }
  0x36   :  { %408 = vmatpush3.bf16.msra.mxu1 %v443_v13 }
  0x37   :  { %409 = vmatprep.subr.bf16.mxu1 %v555_v0 }
  0x38   :  { %390 = vmatpush3.bf16.msra.mxu0 %v435_v5 }
  0x39   :  { %391 = vmatprep.subr.bf16.mxu0 %v555_v0 }
  0x3a   :  { %410 = vmatpush3.bf16.msra.mxu1 %v444_v14 }
  0x3b   :  { %411 = vmatprep.subr.bf16.mxu1 %v555_v0 }
  0x3c   :  { %392 = vmatpush3.bf16.msra.mxu0 %v436_v6 }
  0x3d   :  { %393 = vmatprep.subr.bf16.mxu0 %v555_v0 }
  0x3e   :  { %412 = vmatpush3.bf16.msra.mxu1 %v445_v15 }
  0x3f   :  { %413 = vmatprep.subr.bf16.mxu1 %v555_v0 }
  0x40   :  { %394 = vmatpush3.bf16.msra.mxu0 %v437_v7 }
  0x41   :  { %395 = vmatprep.subr.bf16.mxu0 %v555_v0 }
  0x42   :  { %414 = vmatpush3.bf16.msra.mxu1 %v446_v16 }
  0x43   :  { %415 = vmatprep.subr.bf16.mxu1 %v555_v0 }
  0x44   :  { %396 = vmatpush3.bf16.msra.mxu0 %v438_v8 }
  0x46   :  { %416 = vmatpush3.bf16.msra.mxu1 %v447_v17 }
  0x47   :  { %398 = vmatmul.mubr.bf16.vlgmr.msra.gmra.mxu0 %v439_v9 }
 0x107   :  { %v176_v19 = vpop.f32.mrf.mxu0 }
 0x108   :  { %v177_v20 = vadd.f32 %v340_v18, %v176_v19 }
 0x109   :  { %v399_v21 = vpop.f32.mrf.mxu0 }
 0x10a   :  { %v350_v22 = vmul.f32 -1.442695, %v177_v20 }
 0x10b   :  { %v179_v23 = vpop.f32.mrf.mxu0 }
 0x10c   :  { %448 = vpow2.f32 %v350_v22  ;;  %v180_v24 = vadd.f32 %v340_v18, %v179_v23 }
 0x10d   :  { %v400_v25 = vpop.f32.mrf.mxu0 }
 0x10e   :  { %v351_v26 = vmul.f32 -1.442695, %v180_v24 }
 0x110   :  { %450 = vpow2.f32 %v351_v26 }
 0x119   :  { %v449_v27 = vpop.eup %448 }
 0x11a   :  { %v189_v28 = vadd.f32 1.0, %v449_v27 }
 0x11c   :  { %452 = vrcp.f32 %v189_v28 }
 0x11d   :  { %v451_v29 = vpop.eup %450 }
 0x11e   :  { %v190_v30 = vadd.f32 1.0, %v451_v29 }
 0x120   :  { %454 = vrcp.f32 %v190_v30 }
 0x129   :  { %v453_v31 = vpop.eup %452 }
 0x12d   :  { %v455_v32 = vpop.eup %454 }
 0x12e   :  { %v195_v33 = vpack.c.bf16 %v455_v32, %v453_v31 }
 0x130   :  { %418 = vmatmul.mubr.bf16.vlgmr.msra.gmra.mxu1 %v195_v33 }
 0x1f0   :  { %v301_v35 = vpop.f32.mrf.mxu1 }
 0x1f1   :  { %v302_v36 = vadd.f32 %v352_v34, %v301_v35 }
 0x1f2   :  { %v419_v37 = vpop.f32.mrf.mxu1 }
 0x1f3   :  { %v361_v38 = vmul.f32 -1.442695, %v302_v36 }
 0x1f4   :  { %v304_v39 = vpop.f32.mrf.mxu1 }
 0x1f5   :  { %456 = vpow2.f32 %v361_v38  ;;  %v305_v40 = vadd.f32 %v352_v34, %v304_v39 }
 0x1f6   :  { %v420_v41 = vpop.f32.mrf.mxu1 }
 0x1f7   :  { %v362_v42 = vmul.f32 -1.442695, %v305_v40 }
 0x1f9   :  { %458 = vpow2.f32 %v362_v42 }
 0x202   :  { %v457_v43 = vpop.eup %456 }
 0x203   :  { %v314_v44 = vadd.f32 1.0, %v457_v43 }
 0x205   :  { %460 = vrcp.f32 %v314_v44 }
 0x206   :  { %v459_v45 = vpop.eup %458 }
 0x207   :  { %v315_v46 = vadd.f32 1.0, %v459_v45 }
 0x209   :  { %462 = vrcp.f32 %v315_v46 }
 0x212   :  { %v461_v47 = vpop.eup %460 }
 0x213   :  { %320 = vst [vmem:[#allocation8] sm:$0xff] %v461_v47 }
 0x216   :  { %v463_v48 = vpop.eup %462 }
 0x217   :  { %321 = vst [vmem:[#allocation8 + $0x8] sm:$0xff] %v463_v48 }
 0x218   :  { %535 = shalt.err (!%p532_p5)
}
 0x219   :  { %s558_s12 = smov 128   ;;  %s559_s13 = smov 8  }
 0x21a   :  { %333 = dma.vmem_to_hbm [thread:$0]  %s328_s11, 256, %s613_s5, [#allocation4], %s558_s12, %s558_s12, %s559_s13  }
 0x21b   :  { %548 = dma.done.wait [#allocation4], 256  }
 0x21c   :  { %549 = vsyncadd [#allocation4], 4294967040 }
 0x21d   :  { %337 = vsyncpa [#allocation3], 1 }
 0x21e   :  { %338 = vsyncpa [#allocation6], 1 }
 0x21f   :  { %339 = vsyncpa [#allocation4], 1 }

</bundles_post_ra>
